<compile_context>
chip_gen: v7x
topology: tpu7x:2x2x1
jax: 0.10.0
libtpu: 0.0.40
codegen_flags: <defaults>
</compile_context>

<pallas_src>
import jax
import jax.numpy as jnp
from jax.experimental import pallas as pl


# ------------------------------- kernel -------------------------------------

def _make_kernel(num_classes):
    f32 = jnp.float32
    bf16 = jnp.bfloat16

    def kernel(x_ref, a_ref, pool_ref,
               w1_ref, b1_ref, w2_ref, b2_ref,
               wm1a_ref, wm1b_ref, bm1_ref,
               wm2_ref, bm2_ref,
               wm3_ref, bm3_ref,
               wm4_ref, bm4_ref,
               out_ref):
        x = x_ref[...]        # [TN, F]   bf16   (all batches sublane-stacked)
        a = a_ref[...]        # [TN, TN]  bf16   (block-diagonal normalized adj)
        pool = pool_ref[...]  # [G,  TN]  bf16   (block-diagonal mean-pool)

        def mxu(lhs, rhs):
            return jnp.dot(lhs.astype(bf16), rhs.astype(bf16),
                           preferred_element_type=f32)

        # --- GCN layer 1: tanh(A_hat @ (X @ W1) + b1)  (f32 accumulation) ---
        h1 = jnp.tanh(mxu(a, mxu(x, w1_ref[...])) + b1_ref[...])   # [TN, HC]
        # --- GCN layer 2 ---
        h2 = jnp.tanh(mxu(a, mxu(h1, w2_ref[...])) + b2_ref[...])  # [TN, HC]

        # --- per-graph mean aggregation (all batches at once) ---
        g1 = mxu(pool, h1)      # [G, HC]
        g2 = mxu(pool, h2)      # [G, HC]

        # --- MLP (eval-mode BNs folded into weights); concat -> split matmul ---
        z = mxu(g1, wm1a_ref[...]) + mxu(g2, wm1b_ref[...]) + bm1_ref[...]
        z = jnp.maximum(z, 0.0)
        z = jnp.maximum(mxu(z, wm2_ref[...]) + bm2_ref[...], 0.0)
        z = jnp.maximum(mxu(z, wm3_ref[...]) + bm3_ref[...], 0.0)
        # final classifier kept in f32 (accuracy of near-tie logits)
        logits = jnp.dot(z, wm4_ref[...],
                         preferred_element_type=f32) + bm4_ref[...]  # [G, C_pad]

        # --- LogSoftmax over the real classes only (padded lanes masked) ---
        lane = jax.lax.broadcasted_iota(jnp.int32, logits.shape, 1)
        valid = lane < num_classes
        logits = jnp.where(valid, logits, -1e30)
        m = jnp.max(logits, axis=1, keepdims=True)
        s = logits - m
        p = jnp.where(valid, jnp.exp(s), 0.0)
        lse = jnp.log(jnp.sum(p, axis=1, keepdims=True))
        out_ref[...] = (s - lse).astype(out_ref.dtype)

    return kernel


def fused_forward(x_all, a_blk, pool_blk, params, num_classes, class_pad):
    """Single pallas_call (no grid): every operand is a whole-array VMEM block."""
    g_tot = pool_blk.shape[0]
    return pl.pallas_call(
        _make_kernel(num_classes),
        out_shape=jax.ShapeDtypeStruct((g_tot, class_pad), jnp.float32),
    )(x_all, a_blk, pool_blk, *params)


# ----------------------------- glue (plain JAX) -----------------------------

def build_norm_adj(edge_index, num_nodes):
    """GCN symmetric normalization: D^-1/2 (A + I) D^-1/2 (dense)."""
    src, dst = edge_index
    adj = jnp.zeros((num_nodes, num_nodes), jnp.float32)
    adj = adj.at[dst, src].set(1.0)
    adj = adj.at[src, dst].set(1.0)
    adj = adj + jnp.eye(num_nodes, dtype=jnp.float32)
    deg = jnp.sum(adj, axis=1)
    d_inv_sqrt = 1.0 / jnp.sqrt(deg)
    return adj * d_inv_sqrt[:, None] * d_inv_sqrt[None, :]


def build_mean_pool(batch, num_graphs):
    """pool[g, i] = 1/|V_g| if node i belongs to graph g."""
    onehot = (batch[None, :] == jnp.arange(num_graphs)[:, None]).astype(jnp.float32)
    counts = jnp.sum(onehot, axis=1, keepdims=True)
    return onehot / jnp.maximum(counts, 1.0)


def fold_bn(gamma, beta, mean, var, eps=1e-5):
    scale = gamma / jnp.sqrt(var + eps)
    shift = beta - mean * scale
    return scale.reshape(1, -1), shift.reshape(1, -1)


def init_params(key, num_features, hidden_channels, num_layers, hidden, num_classes):
    assert num_layers == 2, "this synthetic script instantiates num_layers=2"
    keys = iter(jax.random.split(key, 32))

    def lin(k, fan_in, fan_out):
        w = jax.random.normal(k, (fan_in, fan_out), jnp.float32) * 0.1
        b = jax.random.normal(next(keys), (1, fan_out), jnp.float32) * 0.05
        return w, b

    def bn(dim):
        gamma = 1.0 + 0.1 * jax.random.normal(next(keys), (dim,), jnp.float32)
        beta = 0.05 * jax.random.normal(next(keys), (dim,), jnp.float32)
        mean = 0.1 * jax.random.normal(next(keys), (dim,), jnp.float32)
        var = 1.0 + 0.1 * jax.random.uniform(next(keys), (dim,), jnp.float32)
        return fold_bn(gamma, beta, mean, var)

    w1, b1 = lin(next(keys), num_features, hidden_channels)
    w2, b2 = lin(next(keys), hidden_channels, hidden_channels)
    bnh_s, bnh_t = bn(hidden_channels * num_layers)
    wm1, bm1 = lin(next(keys), hidden_channels * num_layers, hidden)
    s1, t1 = bn(hidden)
    wm2, bm2 = lin(next(keys), hidden, hidden // 2)
    s2, t2 = bn(hidden // 2)
    wm3, bm3 = lin(next(keys), hidden // 2, hidden // 2)
    s3, t3 = bn(hidden // 2)
    wm4, bm4 = lin(next(keys), hidden // 2, num_classes)

    return (w1, b1, w2, b2, bnh_s, bnh_t,
            wm1, bm1, s1, t1, wm2, bm2, s2, t2, wm3, bm3, s3, t3, wm4, bm4)


def fold_and_pack(raw, hidden_channels, num_classes, class_pad):
    """Fold eval-mode BN scale/shift into the adjacent Linears, split the first
    MLP weight into the concat halves, pad the classifier to lane width, and
    cast bf16 on MXU-facing matrices (final classifier & biases stay f32)."""
    (w1, b1, w2, b2, bnh_s, bnh_t,
     wm1, bm1, s1, t1, wm2, bm2, s2, t2, wm3, bm3, s3, t3, wm4, bm4) = raw
    bf16, f32 = jnp.bfloat16, jnp.float32

    # Linear1: bnh on the input, mlp-BN1 on the output.
    wm1f = (bnh_s.reshape(-1, 1) * wm1) * s1
    bm1f = (bnh_t @ wm1 + bm1) * s1 + t1
    # Linears 2/3: fold their output BNs.
    wm2f = wm2 * s2
    bm2f = bm2 * s2 + t2
    wm3f = wm3 * s3
    bm3f = bm3 * s3 + t3
    # Split Linear1 rows so the lane-axis concat is never materialized.
    hc = hidden_channels
    wm1a, wm1b = wm1f[:hc], wm1f[hc:]
    # Pad the classifier to a lane-dense width (masked log-softmax in kernel).
    wm4p = jnp.zeros((wm4.shape[0], class_pad), f32).at[:, :num_classes].set(wm4)
    bm4p = jnp.zeros((1, class_pad), f32).at[:, :num_classes].set(bm4)

    w1b, w2b, wm1ab, wm1bb, wm2b, wm3b = (
        m.astype(bf16) for m in (w1, w2, wm1a, wm1b, wm2f, wm3f))

    return (w1b, b1.astype(f32), w2b, b2.astype(f32),
            wm1ab, wm1bb, bm1f.astype(f32),
            wm2b, bm2f.astype(f32),
            wm3b, bm3f.astype(f32),
            wm4p, bm4p.astype(f32))


if __name__ == "__main__":
    # Small synthetic problem: 4 graph-batches, each 2 graphs x 8 nodes,
    # 16 node features, hidden_channels=32, num_layers=2, hidden=32, 4 classes.
    num_batches = 4
    num_graphs = 2
    nodes_per_graph = 8
    num_nodes = num_graphs * nodes_per_graph          # 16 nodes per batch
    num_features = 16
    hidden_channels = 32
    num_layers = 2
    hidden = 32
    num_classes = 4
    class_pad = 128                                   # lane-pad classifier output
    total_graphs = num_batches * num_graphs           # 8 -> exact sublane multiple

    key = jax.random.PRNGKey(0)
    k_x, k_p = jax.random.split(key)

    # node features [NB, N, F]
    x = jax.random.normal(k_x, (num_batches, num_nodes, num_features), jnp.float32)

    # batch vector + ring edges inside each graph (no self loops); shared by all batches
    batch = jnp.repeat(jnp.arange(num_graphs), nodes_per_graph)
    offs = jnp.arange(num_graphs)[:, None] * nodes_per_graph
    src = (offs + jnp.arange(nodes_per_graph)[None, :]).reshape(-1)
    dst = (offs + (jnp.arange(nodes_per_graph)[None, :] + 1) % nodes_per_graph).reshape(-1)
    edge_index = jnp.stack([src, dst])

    a_hat = build_norm_adj(edge_index, num_nodes)     # [N, N]
    pool = build_mean_pool(batch, num_graphs)         # [G_per_batch, N]

    # Collapse the batch grid: sublane-stack features, block-diagonal A_hat/pool.
    eye_nb = jnp.eye(num_batches, dtype=jnp.float32)
    x_all = x.reshape(num_batches * num_nodes, num_features)   # [64, 16]
    a_blk = jnp.kron(eye_nb, a_hat)                            # [64, 64]
    pool_blk = jnp.kron(eye_nb, pool)                          # [8, 64]

    # bf16 MXU inputs (f32 accumulation + f32 activation math inside the kernel)
    x_b = x_all.astype(jnp.bfloat16)
    a_b = a_blk.astype(jnp.bfloat16)
    pool_b = pool_blk.astype(jnp.bfloat16)

    raw = init_params(k_p, num_features, hidden_channels, num_layers,
                      hidden, num_classes)
    params = fold_and_pack(raw, hidden_channels, num_classes, class_pad)

    out_full = fused_forward(x_b, a_b, pool_b, params, num_classes, class_pad)
    out_full = jax.block_until_ready(out_full)                 # [8, 128]

    out = out_full[:, :num_classes].reshape(num_batches, num_graphs, num_classes)

    assert out.shape == (num_batches, num_graphs, num_classes)
    # sanity: rows of a log-softmax exponentiate and sum to 1 over real classes
    assert bool(jnp.allclose(jnp.sum(jnp.exp(out), axis=-1), 1.0, atol=1e-3))
    print("KERNEL_OK")
</pallas_src>

<mosaic_0001>
module attributes {stable_mosaic.version = 11 : i64} {
  func.func @kernel(%arg0: memref<64x16xbf16, #tpu.memory_space<vmem>>, %arg1: memref<64x64xbf16, #tpu.memory_space<vmem>>, %arg2: memref<8x64xbf16, #tpu.memory_space<vmem>>, %arg3: memref<16x32xbf16, #tpu.memory_space<vmem>>, %arg4: memref<1x32xf32, #tpu.memory_space<vmem>>, %arg5: memref<32x32xbf16, #tpu.memory_space<vmem>>, %arg6: memref<1x32xf32, #tpu.memory_space<vmem>>, %arg7: memref<32x32xbf16, #tpu.memory_space<vmem>>, %arg8: memref<32x32xbf16, #tpu.memory_space<vmem>>, %arg9: memref<1x32xf32, #tpu.memory_space<vmem>>, %arg10: memref<32x16xbf16, #tpu.memory_space<vmem>>, %arg11: memref<1x16xf32, #tpu.memory_space<vmem>>, %arg12: memref<16x16xbf16, #tpu.memory_space<vmem>>, %arg13: memref<1x16xf32, #tpu.memory_space<vmem>>, %arg14: memref<16x128xf32, #tpu.memory_space<vmem>>, %arg15: memref<1x128xf32, #tpu.memory_space<vmem>>, %arg16: memref<8x128xf32, #tpu.memory_space<vmem>>) attributes {dimension_semantics = [], scalar_prefetch = 0 : i64, scratch_operands = 0 : i64, tpu.core_type = #tpu.core_type<tc>} {
    %c0 = arith.constant 0 : index
    %c0_0 = arith.constant 0 : index
    %0 = vector.load %arg0[%c0, %c0_0] : memref<64x16xbf16, #tpu.memory_space<vmem>>, vector<64x16xbf16>
    %c0_1 = arith.constant 0 : index
    %c0_2 = arith.constant 0 : index
    %1 = vector.load %arg1[%c0_1, %c0_2] : memref<64x64xbf16, #tpu.memory_space<vmem>>, vector<64x64xbf16>
    %c0_3 = arith.constant 0 : index
    %c0_4 = arith.constant 0 : index
    %2 = vector.load %arg2[%c0_3, %c0_4] : memref<8x64xbf16, #tpu.memory_space<vmem>>, vector<8x64xbf16>
    %c0_5 = arith.constant 0 : index
    %c0_6 = arith.constant 0 : index
    %3 = vector.load %arg3[%c0_5, %c0_6] : memref<16x32xbf16, #tpu.memory_space<vmem>>, vector<16x32xbf16>
    %cst = arith.constant dense<0.000000e+00> : vector<64x32xf32>
    %4 = tpu.matmul %0, %3, %cst {dimension_numbers = #tpu.dot_dimension_numbers<[1], [0], [0], [1], [0, 0, 1, 1], [], []>} : vector<64x16xbf16>, vector<16x32xbf16>, vector<64x32xf32> -> vector<64x32xf32>
    %5 = arith.truncf %4 : vector<64x32xf32> to vector<64x32xbf16>
    %cst_7 = arith.constant dense<0.000000e+00> : vector<64x32xf32>
    %6 = tpu.matmul %1, %5, %cst_7 {dimension_numbers = #tpu.dot_dimension_numbers<[1], [0], [0], [1], [0, 0, 1, 1], [], []>} : vector<64x64xbf16>, vector<64x32xbf16>, vector<64x32xf32> -> vector<64x32xf32>
    %c0_8 = arith.constant 0 : index
    %c0_9 = arith.constant 0 : index
    %7 = vector.load %arg4[%c0_8, %c0_9] : memref<1x32xf32, #tpu.memory_space<vmem>>, vector<1x32xf32>
    %8 = vector.broadcast %7 : vector<1x32xf32> to vector<64x32xf32>
    %9 = arith.addf %6, %8 : vector<64x32xf32>
    %10 = math.tanh %9 : vector<64x32xf32>
    %c0_10 = arith.constant 0 : index
    %c0_11 = arith.constant 0 : index
    %11 = vector.load %arg5[%c0_10, %c0_11] : memref<32x32xbf16, #tpu.memory_space<vmem>>, vector<32x32xbf16>
    %12 = arith.truncf %10 : vector<64x32xf32> to vector<64x32xbf16>
    %cst_12 = arith.constant dense<0.000000e+00> : vector<64x32xf32>
    %13 = tpu.matmul %12, %11, %cst_12 {dimension_numbers = #tpu.dot_dimension_numbers<[1], [0], [0], [1], [0, 0, 1, 1], [], []>} : vector<64x32xbf16>, vector<32x32xbf16>, vector<64x32xf32> -> vector<64x32xf32>
    %14 = arith.truncf %13 : vector<64x32xf32> to vector<64x32xbf16>
    %cst_13 = arith.constant dense<0.000000e+00> : vector<64x32xf32>
    %15 = tpu.matmul %1, %14, %cst_13 {dimension_numbers = #tpu.dot_dimension_numbers<[1], [0], [0], [1], [0, 0, 1, 1], [], []>} : vector<64x64xbf16>, vector<64x32xbf16>, vector<64x32xf32> -> vector<64x32xf32>
    %c0_14 = arith.constant 0 : index
    %c0_15 = arith.constant 0 : index
    %16 = vector.load %arg6[%c0_14, %c0_15] : memref<1x32xf32, #tpu.memory_space<vmem>>, vector<1x32xf32>
    %17 = vector.broadcast %16 : vector<1x32xf32> to vector<64x32xf32>
    %18 = arith.addf %15, %17 : vector<64x32xf32>
    %19 = math.tanh %18 : vector<64x32xf32>
    %20 = arith.truncf %10 : vector<64x32xf32> to vector<64x32xbf16>
    %cst_16 = arith.constant dense<0.000000e+00> : vector<8x32xf32>
    %21 = tpu.matmul %2, %20, %cst_16 {dimension_numbers = #tpu.dot_dimension_numbers<[1], [0], [0], [1], [0, 0, 1, 1], [], []>} : vector<8x64xbf16>, vector<64x32xbf16>, vector<8x32xf32> -> vector<8x32xf32>
    %22 = arith.truncf %19 : vector<64x32xf32> to vector<64x32xbf16>
    %cst_17 = arith.constant dense<0.000000e+00> : vector<8x32xf32>
    %23 = tpu.matmul %2, %22, %cst_17 {dimension_numbers = #tpu.dot_dimension_numbers<[1], [0], [0], [1], [0, 0, 1, 1], [], []>} : vector<8x64xbf16>, vector<64x32xbf16>, vector<8x32xf32> -> vector<8x32xf32>
    %c0_18 = arith.constant 0 : index
    %c0_19 = arith.constant 0 : index
    %24 = vector.load %arg7[%c0_18, %c0_19] : memref<32x32xbf16, #tpu.memory_space<vmem>>, vector<32x32xbf16>
    %25 = arith.truncf %21 : vector<8x32xf32> to vector<8x32xbf16>
    %cst_20 = arith.constant dense<0.000000e+00> : vector<8x32xf32>
    %26 = tpu.matmul %25, %24, %cst_20 {dimension_numbers = #tpu.dot_dimension_numbers<[1], [0], [0], [1], [0, 0, 1, 1], [], []>} : vector<8x32xbf16>, vector<32x32xbf16>, vector<8x32xf32> -> vector<8x32xf32>
    %c0_21 = arith.constant 0 : index
    %c0_22 = arith.constant 0 : index
    %27 = vector.load %arg8[%c0_21, %c0_22] : memref<32x32xbf16, #tpu.memory_space<vmem>>, vector<32x32xbf16>
    %28 = arith.truncf %23 : vector<8x32xf32> to vector<8x32xbf16>
    %cst_23 = arith.constant dense<0.000000e+00> : vector<8x32xf32>
    %29 = tpu.matmul %28, %27, %cst_23 {dimension_numbers = #tpu.dot_dimension_numbers<[1], [0], [0], [1], [0, 0, 1, 1], [], []>} : vector<8x32xbf16>, vector<32x32xbf16>, vector<8x32xf32> -> vector<8x32xf32>
    %30 = arith.addf %26, %29 : vector<8x32xf32>
    %c0_24 = arith.constant 0 : index
    %c0_25 = arith.constant 0 : index
    %31 = vector.load %arg9[%c0_24, %c0_25] : memref<1x32xf32, #tpu.memory_space<vmem>>, vector<1x32xf32>
    %32 = vector.broadcast %31 : vector<1x32xf32> to vector<8x32xf32>
    %33 = arith.addf %30, %32 : vector<8x32xf32>
    %cst_26 = arith.constant 0.000000e+00 : f32
    %34 = vector.broadcast %cst_26 : f32 to vector<8x32xf32>
    %35 = arith.maximumf %33, %34 : vector<8x32xf32>
    %c0_27 = arith.constant 0 : index
    %c0_28 = arith.constant 0 : index
    %36 = vector.load %arg10[%c0_27, %c0_28] : memref<32x16xbf16, #tpu.memory_space<vmem>>, vector<32x16xbf16>
    %37 = arith.truncf %35 : vector<8x32xf32> to vector<8x32xbf16>
    %cst_29 = arith.constant dense<0.000000e+00> : vector<8x16xf32>
    %38 = tpu.matmul %37, %36, %cst_29 {dimension_numbers = #tpu.dot_dimension_numbers<[1], [0], [0], [1], [0, 0, 1, 1], [], []>} : vector<8x32xbf16>, vector<32x16xbf16>, vector<8x16xf32> -> vector<8x16xf32>
    %c0_30 = arith.constant 0 : index
    %c0_31 = arith.constant 0 : index
    %39 = vector.load %arg11[%c0_30, %c0_31] : memref<1x16xf32, #tpu.memory_space<vmem>>, vector<1x16xf32>
    %40 = vector.broadcast %39 : vector<1x16xf32> to vector<8x16xf32>
    %41 = arith.addf %38, %40 : vector<8x16xf32>
    %cst_32 = arith.constant 0.000000e+00 : f32
    %42 = vector.broadcast %cst_32 : f32 to vector<8x16xf32>
    %43 = arith.maximumf %41, %42 : vector<8x16xf32>
    %c0_33 = arith.constant 0 : index
    %c0_34 = arith.constant 0 : index
    %44 = vector.load %arg12[%c0_33, %c0_34] : memref<16x16xbf16, #tpu.memory_space<vmem>>, vector<16x16xbf16>
    %45 = arith.truncf %43 : vector<8x16xf32> to vector<8x16xbf16>
    %cst_35 = arith.constant dense<0.000000e+00> : vector<8x16xf32>
    %46 = tpu.matmul %45, %44, %cst_35 {dimension_numbers = #tpu.dot_dimension_numbers<[1], [0], [0], [1], [0, 0, 1, 1], [], []>} : vector<8x16xbf16>, vector<16x16xbf16>, vector<8x16xf32> -> vector<8x16xf32>
    %c0_36 = arith.constant 0 : index
    %c0_37 = arith.constant 0 : index
    %47 = vector.load %arg13[%c0_36, %c0_37] : memref<1x16xf32, #tpu.memory_space<vmem>>, vector<1x16xf32>
    %48 = vector.broadcast %47 : vector<1x16xf32> to vector<8x16xf32>
    %49 = arith.addf %46, %48 : vector<8x16xf32>
    %cst_38 = arith.constant 0.000000e+00 : f32
    %50 = vector.broadcast %cst_38 : f32 to vector<8x16xf32>
    %51 = arith.maximumf %49, %50 : vector<8x16xf32>
    %c0_39 = arith.constant 0 : index
    %c0_40 = arith.constant 0 : index
    %52 = vector.load %arg14[%c0_39, %c0_40] : memref<16x128xf32, #tpu.memory_space<vmem>>, vector<16x128xf32>
    %cst_41 = arith.constant dense<0.000000e+00> : vector<8x128xf32>
    %53 = tpu.matmul %51, %52, %cst_41 {dimension_numbers = #tpu.dot_dimension_numbers<[1], [0], [0], [1], [0, 0, 1, 1], [], []>} : vector<8x16xf32>, vector<16x128xf32>, vector<8x128xf32> -> vector<8x128xf32>
    %c0_42 = arith.constant 0 : index
    %c0_43 = arith.constant 0 : index
    %54 = vector.load %arg15[%c0_42, %c0_43] : memref<1x128xf32, #tpu.memory_space<vmem>>, vector<1x128xf32>
    %55 = vector.broadcast %54 : vector<1x128xf32> to vector<8x128xf32>
    %56 = arith.addf %53, %55 : vector<8x128xf32>
    %57 = tpu.iota {dimensions = array<i32: 1>} : vector<8x128xi32>
    %c4_i32 = arith.constant 4 : i32
    %58 = vector.broadcast %c4_i32 : i32 to vector<8x128xi32>
    %59 = arith.cmpi slt, %57, %58 : vector<8x128xi32>
    %cst_44 = arith.constant -1.000000e+30 : f32
    %60 = vector.broadcast %cst_44 : f32 to vector<8x128xf32>
    %61 = arith.select %59, %56, %60 : vector<8x128xi1>, vector<8x128xf32>
    %cst_45 = arith.constant dense<0xFF800000> : vector<8xf32>
    %62 = vector.multi_reduction <maximumf>, %61, %cst_45 [1] : vector<8x128xf32> to vector<8xf32>
    %63 = vector.shape_cast %62 : vector<8xf32> to vector<8x1xf32>
    %64 = vector.broadcast %63 : vector<8x1xf32> to vector<8x128xf32>
    %65 = arith.subf %61, %64 : vector<8x128xf32>
    %66 = math.exp %65 : vector<8x128xf32>
    %cst_46 = arith.constant 0.000000e+00 : f32
    %67 = vector.broadcast %cst_46 : f32 to vector<8x128xf32>
    %68 = arith.select %59, %66, %67 : vector<8x128xi1>, vector<8x128xf32>
    %cst_47 = arith.constant dense<0.000000e+00> : vector<8xf32>
    %69 = vector.multi_reduction <add>, %68, %cst_47 [1] : vector<8x128xf32> to vector<8xf32>
    %70 = vector.shape_cast %69 : vector<8xf32> to vector<8x1xf32>
    %71 = math.log %70 : vector<8x1xf32>
    %72 = vector.broadcast %71 : vector<8x1xf32> to vector<8x128xf32>
    %73 = arith.subf %65, %72 : vector<8x128xf32>
    %c0_48 = arith.constant 0 : index
    %c0_49 = arith.constant 0 : index
    %74 = vector.load %arg16[%c0_48, %c0_49] : memref<8x128xf32, #tpu.memory_space<vmem>>, vector<8x128xf32>
    tpu.vector_store %arg16[%c0_48, %c0_49], %73 {strides = array<i32>} : memref<8x128xf32, #tpu.memory_space<vmem>>, vector<8x128xf32>,
    return
  }
}

</mosaic_0001>

<bundles_post_ra>
// kernel: tpu_custom_call.1
= control target key start
LH: loop header
LB: loop body
LE: loop exit
PB: predicated region body
PF: predicated region fallthrough
CT: control target
= control target key end

     0   :  { %s1715_s0 = inlined_call_operand.vmem [shape: bf16[64,16], index: 0, kind: input, shape index: {}]   ;;  %s1716_s1 = inlined_call_operand.vmem [shape: bf16[64,64], index: 1, kind: input, shape index: {}]   ;;  %s1717_s2 = inlined_call_operand.hbm [shape: bf16[8,64], index: 2, kind: input, shape index: {}]   ;;  %s1718_s3 = inlined_call_operand.hbm [shape: bf16[16,32], index: 3, kind: input, shape index: {}]   ;;  %s1719_s4 = inlined_call_operand.vmem [shape: f32[1,32], index: 4, kind: input, shape index: {}]   ;;  %s1720_s5 = inlined_call_operand.vmem [shape: bf16[32,32], index: 5, kind: input, shape index: {}]   ;;  %s1721_s6 = inlined_call_operand.hbm [shape: f32[1,32], index: 6, kind: input, shape index: {}]   ;;  %s1722_s7 = inlined_call_operand.vmem [shape: bf16[32,32], index: 7, kind: input, shape index: {}]   ;;  %s1723_s8 = inlined_call_operand.vmem [shape: bf16[32,32], index: 8, kind: input, shape index: {}]   ;;  %s1724_s9 = inlined_call_operand.hbm [shape: f32[1,32], index: 9, kind: input, shape index: {}]   ;;  %s1725_s10 = inlined_call_operand.vmem [shape: bf16[32,16], index: 10, kind: input, shape index: {}]   ;;  %s1726_s11 = inlined_call_operand.hbm [shape: f32[1,16], index: 11, kind: input, shape index: {}]   ;;  %s1727_s12 = inlined_call_operand.vmem [shape: bf16[16,16], index: 12, kind: input, shape index: {}]   ;;  %s1728_s13 = inlined_call_operand.vmem [shape: f32[1,16], index: 13, kind: input, shape index: {}]   ;;  %s1729_s14 = inlined_call_operand.vmem [shape: f32[16,128], index: 14, kind: input, shape index: {}]   ;;  %s1730_s15 = inlined_call_operand.vmem [shape: f32[1,128], index: 15, kind: input, shape index: {}]   ;;  %s1731_s16 = inlined_call_operand.hbm [shape: f32[8,128], index: 16, kind: output, shape index: {}]  }
   0x1   :  { %1734 = sst [smem:[#allocation16_spill]] %s1715_s0 }
   0x2   :  { %1735 = sst [smem:[#allocation17_spill]] %s1731_s16 }
   0x3   :  { %21 = vsyncpa [#allocation3], 0 }
   0x4   :  { %22 = vsyncpa [#allocation6], 0 }
   0x5   :  { %23 = vsyncpa [#allocation9], 0 }
   0x6   :  { %24 = vsyncpa [#allocation4], 0  ;;  %s1417_s21 = smov [#allocation5]   ;;  %s1277_s25 = scalar_lea.hbm %s1718_s3, 128 }
   0x7   :  { %s44_s22 = sshll.u32 %s1417_s21, 4  ;;  %p1278_p0 = scmp.ne.s32.totalorder %s1718_s3, %s1277_s25  ;;  %s45_s22 = int_to_ptr.vmem [resolvable:$true] %s44_s22 }
   0x8   :  { %p1281_p1 = scmp.lt.u32.totalorder %s1277_s25, %s1718_s3 }
   0xa   :  { %p1283_p2 = pnand %p1281_p1, %p1278_p0 }
   0xc   :  { %1286 = shalt.err (!%p1283_p2)
}
   0xd   :  { %s1287_s30 = scalar_lea.vmem %s45_s22, 128  ;;  %p1292_p4 = scmp.lt.s32.totalorder %s45_s22, %s45_s22 }
   0xe   :  { %p1288_p3 = scmp.ne.s32.totalorder %s45_s22, %s1287_s30  ;;  %p1293_p5 = scmp.lt.s32.totalorder %s1287_s30, %s1287_s30 }
  0x10   :  { %p1294_p6 = por %p1293_p5, %p1292_p4 }
  0x12   :  { %p1295_p7 = pnand %p1294_p6, %p1288_p3 }
  0x14   :  { %1298 = shalt.err (!%p1295_p7)
}
  0x15   :  { %s1418_s0 = smov 64   ;;  %s1419_s17 = smov 4  }
  0x16   :  { %50 = dma.hbm_to_vmem [thread:$0]  %s1718_s3, 128, %s45_s22, [#allocation6], %s1418_s0, %s1418_s0, %s1419_s17  }
  0x17   :  { %s1420_s20 = smov [#allocation8]   ;;  %s1421_s23 = smov [#allocation2]  }
  0x18   :  { %s75_s21 = sshll.u32 %s1420_s20, 4  ;;  %s35_s24 = sshll.u32 %s1421_s23, 4  ;;  %s76_s21 = int_to_ptr.vmem [resolvable:$true] %s75_s21  ;;  %s36_s24 = int_to_ptr.vmem [resolvable:$true] %s35_s24 }
  0x19   :  { %s1299_s27 = scalar_lea.hbm %s1724_s9, 16 }
  0x1a   :  { %p1300_p8 = scmp.ne.s32.totalorder %s1724_s9, %s1299_s27  ;;  %p1303_p9 = scmp.lt.u32.totalorder %s1299_s27, %s1724_s9 }
  0x1c   :  { %p1305_p10 = pnand %p1303_p9, %p1300_p8 }
  0x1e   :  { %1308 = shalt.err (!%p1305_p10)
}
  0x1f   :  { %s1309_s3 = scalar_lea.vmem %s76_s21, 16  ;;  %s1313_s22 = scalar_lea.vmem %s76_s21, 32 }
  0x20   :  { %p1310_p11 = scmp.ne.s32.totalorder %s76_s21, %s1309_s3  ;;  %p1314_p12 = scmp.lt.s32.totalorder %s76_s21, %s76_s21 }
  0x21   :  { %p1315_p13 = scmp.lt.s32.totalorder %s1313_s22, %s1309_s3 }
  0x23   :  { %p1316_p0 = por %p1315_p13, %p1314_p12 }
  0x25   :  { %p1317_p1 = pnand %p1316_p0, %p1310_p11 }
  0x27   :  { %1320 = shalt.err (!%p1317_p1)
}
  0x28   :  { %78 = dma.hbm_to_vmem [thread:$0]  %s1724_s9, 16, %s76_s21, [#allocation9]  }
  0x29   :  { %s1321_s16 = scalar_lea.hbm %s1717_s2, 64 }
  0x2a   :  { %p1322_p2 = scmp.ne.s32.totalorder %s1717_s2, %s1321_s16  ;;  %p1325_p3 = scmp.lt.u32.totalorder %s1321_s16, %s1717_s2 }
  0x2c   :  { %p1327_p4 = pnand %p1325_p3, %p1322_p2 }
  0x2e   :  { %1330 = shalt.err (!%p1327_p4)
}
  0x2f   :  { %s1331_s27 = scalar_lea.vmem %s36_s24, 64  ;;  %p1336_p6 = scmp.lt.s32.totalorder %s36_s24, %s36_s24 }
  0x30   :  { %p1332_p5 = scmp.ne.s32.totalorder %s36_s24, %s1331_s27  ;;  %p1337_p7 = scmp.lt.s32.totalorder %s1331_s27, %s1331_s27 }
  0x32   :  { %p1338_p8 = por %p1337_p7, %p1336_p6 }
  0x34   :  { %p1339_p9 = pnand %p1338_p8, %p1332_p5 }
  0x36   :  { %1342 = shalt.err (!%p1339_p9)
}
  0x37   :  { %38 = dma.hbm_to_vmem [thread:$0]  %s1717_s2, 64, %s36_s24, [#allocation3]  }
  0x38   :  { %s1422_s28 = smov [#allocation7]   ;;  %s1423_s30 = smov [#allocation10]  }
  0x39   :  { %s61_s29 = sshll.u32 %s1422_s28, 4  ;;  %s87_s3 = sshll.u32 %s1423_s30, 4  ;;  %s62_s29 = int_to_ptr.vmem [resolvable:$true] %s61_s29  ;;  %s88_s3 = int_to_ptr.vmem [resolvable:$true] %s87_s3 }
  0x3a   :  { %s1343_s17 = scalar_lea.hbm %s1721_s6, 16 }
  0x3b   :  { %p1344_p10 = scmp.ne.s32.totalorder %s1721_s6, %s1343_s17  ;;  %p1347_p11 = scmp.lt.u32.totalorder %s1343_s17, %s1721_s6 }
  0x3d   :  { %p1349_p12 = pnand %p1347_p11, %p1344_p10 }
  0x3f   :  { %1352 = shalt.err (!%p1349_p12)
}
  0x40   :  { %s1353_s2 = scalar_lea.vmem %s62_s29, 16  ;;  %s1357_s24 = scalar_lea.vmem %s62_s29, 32 }
  0x41   :  { %p1354_p13 = scmp.ne.s32.totalorder %s62_s29, %s1353_s2  ;;  %p1358_p0 = scmp.lt.s32.totalorder %s62_s29, %s62_s29 }
  0x42   :  { %p1359_p1 = scmp.lt.s32.totalorder %s1357_s24, %s1353_s2 }
  0x44   :  { %p1360_p2 = por %p1359_p1, %p1358_p0 }
  0x46   :  { %p1361_p3 = pnand %p1360_p2, %p1354_p13 }
  0x48   :  { %1364 = shalt.err (!%p1361_p3)
}
  0x49   :  { %64 = dma.hbm_to_vmem [thread:$0]  %s1721_s6, 16, %s62_s29, [#allocation6]  }
  0x4a   :  { %s1365_s9 = scalar_lea.hbm %s1726_s11, 16 }
  0x4b   :  { %p1366_p4 = scmp.ne.s32.totalorder %s1726_s11, %s1365_s9  ;;  %p1369_p5 = scmp.lt.u32.totalorder %s1365_s9, %s1726_s11 }
  0x4d   :  { %p1371_p6 = pnand %p1369_p5, %p1366_p4 }
  0x4f   :  { %1374 = shalt.err (!%p1371_p6)
}
  0x50   :  { %s1375_s0 = scalar_lea.vmem %s88_s3, 16  ;;  %s1379_s17 = scalar_lea.vmem %s88_s3, 32 }
  0x51   :  { %p1376_p7 = scmp.ne.s32.totalorder %s88_s3, %s1375_s0  ;;  %p1380_p8 = scmp.lt.s32.totalorder %s88_s3, %s88_s3 }
  0x52   :  { %p1381_p9 = scmp.lt.s32.totalorder %s1379_s17, %s1375_s0 }
  0x54   :  { %p1382_p10 = por %p1381_p9, %p1380_p8 }
  0x56   :  { %p1383_p11 = pnand %p1382_p10, %p1376_p7 }
  0x58   :  { %1386 = shalt.err (!%p1383_p11)
}
  0x59   :  { %90 = dma.hbm_to_vmem [thread:$0]  %s1726_s11, 16, %s88_s3, [#allocation9]  }
  0x5a   :  { %1409 = dma.done.wait [#allocation3], 64  }
  0x5b   :  { %1410 = vsyncadd [#allocation3], 4294967232 }
  0x5c   :  { %1411 = dma.done.wait [#allocation6], 144  }
  0x5d   :  { %1412 = vsyncadd [#allocation6], 4294967152 }
  0x5e   :  { %1413 = dma.done.wait [#allocation9], 32  }
  0x5f   :  { %1414 = vsyncadd [#allocation9], 4294967264  ;;  %v1223_v0 = vld [vmem:[#allocation5] sm:$0xff]   ;;  %vm160_vm0 = vcmask 130048   ;;  %s1736_s16 = sld [smem:[#allocation16_spill]]  ;;  %vm269_vm1 = vcmask 523264  }
  0x60   :  { %1094 = vmatprep.subr.bf16.mxu0 %v1223_v0  ;;  %v1228_v5 = vld [vmem:[%s1716_s1] sm:$0xff]   ;;  %v1596_v18 = vld [vmem:[%s1716_s1 + $0x8] sm:$0xff]   ;;  %v1601_v19 = vld [vmem:[%s1716_s1 + $0x10] sm:$0xff]   ;;  %v1424_v23 = vmov 0.0   ;;  %vm375_vm2 = vcmask 261120   ;;  %vm1425_vm3 = vmmov 0  }
  0x61   :  { %1095 = vmatpush3.bf16.msra.mxu0 %v1223_v0  ;;  %1112 = vmatprep.mubr.msk.bf16.mxu1 %vm269_vm1, %v1228_v5  ;;  %v1610_v20 = vld [vmem:[%s1716_s1 + $0x18] sm:$0xff]   ;;  %v1232_v21 = vld [vmem:[%s1720_s5] sm:$0xff]   ;;  %v1233_v22 = vld [vmem:[%s1720_s5 + $0x8] sm:$0xff]  }
  0x62   :  { %1120 = vmatprep.subr.bf16.mxu0 %v1232_v21  ;;  %v1005_v24 = vld [vmem:[%s1719_s4] ss:$0 sm:$0xff] }
  0x65   :  { %v1224_v1 = vld [vmem:[%s1736_s16] sm:$0xff]   ;;  %v1225_v2 = vld [vmem:[%s1736_s16 + $0x8] sm:$0xff]   ;;  %v1226_v3 = vld [vmem:[%s1736_s16 + $0x10] sm:$0xff]  }
  0x66   :  { %1096 = vmatprep.mubr.msk.bf16.mxu0 %vm160_vm0, %v1224_v1  ;;  %v1227_v4 = vld [vmem:[%s1736_s16 + $0x18] sm:$0xff]   ;;  %v131_v1 = vld [vmem:[#allocation2] sm:$0xf] }
  0x67   :  { %1097 = vmatmul.mubr.msk.bf16.vlgmr.msra.gmra.mrb[0].mxu0 %vm160_vm0, %v1225_v2  ;;  %v1234_v2 = vld [vmem:[%s1723_s8] sm:$0xff]  }
  0x68   :  { %1100 = vmatprep.mubr.msk.bf16.mxu0 %vm160_vm0, %v1226_v3  ;;  %1121 = vmatpush3.bf16.msra.mxu0 %v1232_v21  ;;  %v1020_v3 = vld [vmem:[#allocation7] ss:$0 sm:$0xff] }
  0x69   :  { %1122 = vmatprep.subr.bf16.mxu0 %v1233_v22 }
  0x6c   :  { %1123 = vmatpush3.bf16.msra.mxu0 %v1233_v22 }
  0x6d   :  { %1148 = vmatprep.subr.bf16.mxu0 %v1424_v23 }
  0x6f   :  { %1101 = vmatmul.mubr.msk.bf16.gmra.mrb[4].mxu0 %vm160_vm0, %v1227_v4 }
 0x13a   :  { %v1098_v6 = vpop.f32.mrb[0].mxu0 }
 0x13b   :  { %v207_v7 = vpop.f32.mrb[1].mxu0 }
 0x13c   :  { %v1099_v8 = vpop.f32.mrb[2].mxu0 }
 0x13d   :  { %v239_v9 = vpack.c.bf16 %v1099_v8, %v1098_v6  ;;  %v210_v10 = vpop.f32.mrb[3].mxu0 }
 0x13e   :  { %v238_v11 = vpack.c.bf16 %v210_v10, %v207_v7 }
 0x140   :  { %1104 = vmatprep.subr.bf16.mxu1 %v238_v11 }
 0x141   :  { %1105 = vmatpush3.bf16.msra.mxu1 %v238_v11 }
 0x142   :  { %v1102_v12 = vpop.f32.mrb[4].mxu0  ;;  %1106 = vmatprep.subr.bf16.mxu1 %v239_v9 }
 0x143   :  { %v223_v13 = vpop.f32.mrb[5].mxu0 }
 0x144   :  { %v1103_v14 = vpop.f32.mrb[6].mxu0 }
 0x145   :  { %v241_v15 = vpack.c.bf16 %v1103_v14, %v1102_v12  ;;  %v226_v16 = vpop.f32.mrb[7].mxu0  ;;  %1107 = vmatpush3.bf16.msra.mxu1 %v239_v9 }
 0x146   :  { %v240_v17 = vpack.c.bf16 %v226_v16, %v223_v13 }
 0x148   :  { %1108 = vmatprep.subr.bf16.mxu1 %v240_v17 }
 0x149   :  { %1109 = vmatpush3.bf16.msra.mxu1 %v240_v17 }
 0x14a   :  { %1110 = vmatprep.subr.bf16.mxu1 %v241_v15 }
 0x14d   :  { %1111 = vmatpush3.bf16.msra.mxu1 %v241_v15 }
 0x150   :  { %1113 = vmatmul.mubr.msk.bf16.vlgmr.msra.gmra.mrb[0].mxu1 %vm269_vm1, %v1596_v18 }
 0x151   :  { %1116 = vmatprep.mubr.msk.bf16.mxu1 %vm269_vm1, %v1601_v19 }
 0x158   :  { %1117 = vmatmul.mubr.msk.bf16.gmra.mrb[4].mxu1 %vm269_vm1, %v1610_v20 }
 0x159   :  { %1140 = vmatprep.mubr.msk.bf16.mxu1 %vm269_vm1, %v1228_v5 }
 0x223   :  { %v1114_v25 = vpop.f32.mrb[0].mxu1 }
 0x224   :  { %v325_v26 = vadd.f32 %v1114_v25, %v1005_v24  ;;  %v316_v27 = vpop.f32.mrb[1].mxu1 }
 0x225   :  { %v317_v28 = vadd.f32 %v1005_v24, %v316_v27  ;;  %v1115_v29 = vpop.f32.mrb[2].mxu1 }
 0x226   :  { %1241 = vtanh.f32 %v325_v26  ;;  %v328_v30 = vadd.f32 %v1115_v29, %v1005_v24  ;;  %v319_v31 = vpop.f32.mrb[3].mxu1 }
 0x227   :  { %1243 = vtanh.f32 %v317_v28  ;;  %v320_v32 = vadd.f32 %v1005_v24, %v319_v31 }
 0x228   :  { %1245 = vtanh.f32 %v328_v30 }
 0x229   :  { %1247 = vtanh.f32 %v320_v32 }
 0x22b   :  { %v1118_v33 = vpop.f32.mrb[4].mxu1 }
 0x22c   :  { %v341_v34 = vadd.f32 %v1118_v33, %v1005_v24  ;;  %v332_v35 = vpop.f32.mrb[5].mxu1  ;;  %v1235_v33 = vld [vmem:[%s1723_s8 + $0x8] sm:$0xff]  }
 0x22d   :  { %v333_v36 = vadd.f32 %v1005_v24, %v332_v35  ;;  %v1119_v37 = vpop.f32.mrb[6].mxu1 }
 0x22e   :  { %1249 = vtanh.f32 %v341_v34  ;;  %v344_v38 = vadd.f32 %v1119_v37, %v1005_v24  ;;  %v335_v39 = vpop.f32.mrb[7].mxu1 }
 0x22f   :  { %1251 = vtanh.f32 %v333_v36  ;;  %v336_v40 = vadd.f32 %v1005_v24, %v335_v39  ;;  %v1236_v39 = vld [vmem:[%s1722_s7] sm:$0xff]  }
 0x230   :  { %v1242_v41 = vpop.eup %1241  ;;  %1253 = vtanh.f32 %v344_v38 }
 0x231   :  { %v1244_v42 = vpop.eup %1243  ;;  %1255 = vtanh.f32 %v336_v40 }
 0x232   :  { %v1246_v43 = vpop.eup %1245 }
 0x233   :  { %v1248_v44 = vpop.eup %1247  ;;  %v360_v45 = vpack.c.bf16 %v1246_v43, %v1242_v41 }
 0x234   :  { %v359_v46 = vpack.c.bf16 %v1248_v44, %v1244_v42  ;;  %v1237_v44 = vld [vmem:[%s1722_s7 + $0x8] sm:$0xff]  }
 0x236   :  { %1124 = vmatprep.mubr.msk.bf16.mxu0 %vm375_vm2, %v359_v46 }
 0x237   :  { %1125 = vmatmul.mubr.msk.bf16.vlgmr.msra.gmra.mrb[8].mxu0 %vm375_vm2, %v360_v45 }
 0x238   :  { %v1250_v47 = vpop.eup %1249  ;;  %1149 = vmatpush3.bf16.msra.mxu0 %v359_v46  ;;  %v1238_v46 = vld [vmem:[%s1725_s10] sm:$0xff]  }
 0x239   :  { %v1252_v48 = vpop.eup %1251  ;;  %1150 = vmatprep.subr.bf16.mxu0 %v1424_v23 }
 0x23a   :  { %v1254_v49 = vpop.eup %1253 }
 0x23b   :  { %v1256_v50 = vpop.eup %1255  ;;  %v362_v51 = vpack.c.bf16 %v1254_v49, %v1250_v47  ;;  %v1239_v47 = vld [vmem:[%s1725_s10 + $0x8] sm:$0xff]  }
 0x23c   :  { %1151 = vmatpush3.bf16.msra.mxu0 %v360_v45  ;;  %v361_v52 = vpack.c.bf16 %v1256_v50, %v1252_v48 }
 0x23d   :  { %1152 = vmatprep.subr.bf16.mxu0 %v1424_v23 }
 0x23e   :  { %1128 = vmatprep.mubr.msk.bf16.mxu0 %vm375_vm2, %v361_v52 }
 0x23f   :  { %1129 = vmatmul.mubr.msk.bf16.gmra.mrb[12].mxu0 %vm375_vm2, %v362_v51 }
 0x240   :  { %1153 = vmatpush3.bf16.msra.mxu0 %v361_v52  ;;  %1156 = vmatprep.mubr.msk.bf16.mxu0 %vm1425_vm3, %v1424_v23 }
 0x241   :  { %1154 = vmatprep.subr.bf16.mxu0 %v1424_v23 }
 0x244   :  { %1155 = vmatpush3.bf16.msra.mxu0 %v362_v51 }
 0x245   :  { %1172 = vmatprep.subr.bf16.mxu0 %v1424_v23 }
 0x247   :  { %1157 = vmatmul.mubr.msk.bf16.vlgmr.msra.gmra.mrb[16].mxu0 %vm269_vm1, %v131_v1 }
 0x248   :  { %1176 = vmatprep.mubr.msk.bf16.mxu0 %vm1425_vm3, %v1424_v23  ;;  %1173 = vmatpush3.bf16.msra.mxu0 %v1234_v2  ;;  %v1034_v2 = vld [vmem:[#allocation10] ss:$0 sm:$0xff] }
 0x249   :  { %1174 = vmatprep.subr.bf16.mxu0 %v1424_v23 }
 0x24c   :  { %1175 = vmatpush3.bf16.msra.mxu0 %v1235_v33 }
 0x24d   :  { %1180 = vmatprep.subr.bf16.mxu0 %v1424_v23 }
 0x30a   :  { %v1126_v53 = vpop.f32.mrb[8].mxu0 }
 0x30b   :  { %v422_v54 = vpop.f32.mrb[9].mxu0 }
 0x30c   :  { %v1127_v55 = vpop.f32.mrb[10].mxu0 }
 0x30d   :  { %v454_v56 = vpack.c.bf16 %v1127_v55, %v1126_v53  ;;  %v425_v57 = vpop.f32.mrb[11].mxu0  ;;  %v1033_v53 = vld [vmem:[#allocation8] ss:$0 sm:$0xff] }
 0x30e   :  { %v453_v58 = vpack.c.bf16 %v425_v57, %v422_v54 }
 0x310   :  { %1132 = vmatprep.subr.bf16.mxu1 %v453_v58 }
 0x311   :  { %1133 = vmatpush3.bf16.msra.mxu1 %v453_v58 }
 0x312   :  { %v1130_v59 = vpop.f32.mrb[12].mxu0  ;;  %1134 = vmatprep.subr.bf16.mxu1 %v454_v56 }
 0x313   :  { %v438_v60 = vpop.f32.mrb[13].mxu0 }
 0x314   :  { %v1131_v61 = vpop.f32.mrb[14].mxu0 }
 0x315   :  { %v456_v62 = vpack.c.bf16 %v1131_v61, %v1130_v59  ;;  %v441_v63 = vpop.f32.mrb[15].mxu0  ;;  %1135 = vmatpush3.bf16.msra.mxu1 %v454_v56  ;;  %v1240_v61 = vld [vmem:[%s1727_s12] sm:$0xff]  }
 0x316   :  { %v455_v0 = vpack.c.bf16 %v441_v63, %v438_v60  ;;  %v882_v63 = vld [vmem:[%s1729_s14 + $0x8] sm:$0xff] }
 0x318   :  { %1136 = vmatprep.subr.bf16.mxu1 %v455_v0 }
 0x319   :  { %1137 = vmatpush3.bf16.msra.mxu1 %v455_v0  ;;  %v1426_v0 = vmov 0.0|0.0  }
 0x31a   :  { %1138 = vmatprep.subr.bf16.mxu1 %v456_v62  ;;  %v574_v34 = vpop.f32.mrb[16].mxu0 }
 0x31b   :  { %v1158_v35 = vpop.f32.mrb[17].mxu0  ;;  %v628_v45 = vpack.c.bf16 %v574_v34, %v574_v34 }
 0x31c   :  { %v577_v36 = vpop.f32.mrb[18].mxu0 }
 0x31d   :  { %1139 = vmatpush3.bf16.msra.mxu1 %v456_v62  ;;  %v1159_v37 = vpop.f32.mrb[19].mxu0  ;;  %v881_v62 = vld [vmem:[%s1729_s14] sm:$0xff] }
 0x31e   :  { %1160 = vmatprep.subr.bf16.mxu1 %v1424_v23 }
 0x320   :  { %1141 = vmatmul.mubr.msk.bf16.vlgmr.msra.gmra.mrb[8].mxu1 %vm269_vm1, %v1596_v18 }
 0x321   :  { %1144 = vmatprep.mubr.msk.bf16.mxu1 %vm269_vm1, %v1601_v19 }
 0x328   :  { %1145 = vmatmul.mubr.msk.bf16.gmra.mrb[12].mxu1 %vm269_vm1, %v1610_v20 }
 0x329   :  { %1168 = vmatprep.mubr.msk.bf16.mxu1 %vm1425_vm3, %v1424_v23 }
 0x3f3   :  { %v1142_v4 = vpop.f32.mrb[8].mxu1 }
 0x3f4   :  { %v507_v5 = vadd.f32 %v1142_v4, %v1020_v3  ;;  %v498_v6 = vpop.f32.mrb[9].mxu1 }
 0x3f5   :  { %v499_v7 = vadd.f32 %v1020_v3, %v498_v6  ;;  %v1143_v8 = vpop.f32.mrb[10].mxu1 }
 0x3f6   :  { %1257 = vtanh.f32 %v507_v5  ;;  %v510_v9 = vadd.f32 %v1143_v8, %v1020_v3  ;;  %v501_v10 = vpop.f32.mrb[11].mxu1 }
 0x3f7   :  { %1259 = vtanh.f32 %v499_v7  ;;  %v502_v11 = vadd.f32 %v1020_v3, %v501_v10 }
 0x3f8   :  { %1261 = vtanh.f32 %v510_v9  ;;  %v1038_v9 = vld [vmem:[%s1728_s13] ss:$0 sm:$0xff]  ;;  %s1427_s13 = smov [#allocation11]  }
 0x3f9   :  { %1263 = vtanh.f32 %v502_v11  ;;  %s985_s22 = sshll.u32 %s1427_s13, 4  ;;  %s986_s22 = int_to_ptr.vmem [resolvable:$true] %s985_s22 }
 0x3fa   :  { %p1392_p13 = scmp.lt.s32.totalorder %s986_s22, %s986_s22 }
 0x3fb   :  { %v1146_v12 = vpop.f32.mrb[12].mxu1 }
 0x3fc   :  { %v523_v13 = vadd.f32 %v1146_v12, %v1020_v3  ;;  %v514_v14 = vpop.f32.mrb[13].mxu1 }
 0x3fd   :  { %v515_v15 = vadd.f32 %v1020_v3, %v514_v14  ;;  %v1147_v16 = vpop.f32.mrb[14].mxu1 }
 0x3fe   :  { %1265 = vtanh.f32 %v523_v13  ;;  %v526_v17 = vadd.f32 %v1147_v16, %v1020_v3  ;;  %v517_v18 = vpop.f32.mrb[15].mxu1  ;;  %v963_v16 = vlaneseq }
 0x3ff   :  { %1267 = vtanh.f32 %v515_v15  ;;  %v518_v19 = vadd.f32 %v1020_v3, %v517_v18  ;;  %v1041_v18 = vld [vmem:[%s1730_s15] ss:$0 sm:$0xff]  ;;  %s1387_s15 = scalar_lea.vmem %s986_s22, 128 }
 0x400   :  { %v1258_v20 = vpop.eup %1257  ;;  %1269 = vtanh.f32 %v526_v17  ;;  %v964_v17 = vand.u32 127, %v963_v16  ;;  %p1388_p12 = scmp.ne.s32.totalorder %s986_s22, %s1387_s15  ;;  %p1393_p0 = scmp.lt.s32.totalorder %s1387_s15, %s1387_s15 }
 0x401   :  { %v1260_v21 = vpop.eup %1259  ;;  %1271 = vtanh.f32 %v518_v19 }
 0x402   :  { %v1262_v22 = vpop.eup %1261  ;;  %vm965_vm4 = vcmp.lt.s32.totalorder %v964_v17, 4  ;;  %p1394_p1 = por %p1393_p0, %p1392_p13 }
 0x403   :  { %v1264_v24 = vpop.eup %1263  ;;  %v581_v25 = vpack.c.bf16 %v1262_v22, %v1258_v20 }
 0x404   :  { %v580_v26 = vpack.c.bf16 %v1264_v24, %v1260_v21  ;;  %p1395_p2 = pnand %p1394_p1, %p1388_p12 }
 0x406   :  { %1161 = vmatpush3.bf16.msra.mxu1 %v580_v26 }
 0x407   :  { %1162 = vmatprep.subr.bf16.mxu1 %v1424_v23 }
 0x408   :  { %v1266_v27 = vpop.eup %1265 }
 0x409   :  { %v1268_v28 = vpop.eup %1267 }
 0x40a   :  { %v1270_v29 = vpop.eup %1269  ;;  %1163 = vmatpush3.bf16.msra.mxu1 %v581_v25 }
 0x40b   :  { %v1272_v30 = vpop.eup %1271  ;;  %1164 = vmatprep.subr.bf16.mxu1 %v1424_v23  ;;  %v583_v31 = vpack.c.bf16 %v1270_v29, %v1266_v27 }
 0x40c   :  { %v582_v32 = vpack.c.bf16 %v1272_v30, %v1268_v28 }
 0x40e   :  { %1165 = vmatpush3.bf16.msra.mxu1 %v582_v32 }
 0x40f   :  { %1166 = vmatprep.subr.bf16.mxu1 %v1424_v23 }
 0x412   :  { %1167 = vmatpush3.bf16.msra.mxu1 %v583_v31 }
 0x413   :  { %1188 = vmatprep.subr.bf16.mxu1 %v1424_v23 }
 0x415   :  { %1169 = vmatmul.mubr.msk.bf16.vlgmr.msra.gmra.mrb[16].mxu1 %vm269_vm1, %v131_v1  ;;  %v1210_v1 = vpack.c.bf16 %v882_v63, %v881_v62 }
 0x416   :  { %1192 = vmatprep.mubr.msk.bf16.mxu1 %vm1425_vm3, %v1424_v23  ;;  %1189 = vmatpush3.bf16.msra.mxu1 %v1238_v46 }
 0x417   :  { %1190 = vmatprep.subr.bf16.mxu1 %v1424_v23 }
 0x41a   :  { %1191 = vmatpush3.bf16.msra.mxu1 %v1239_v47 }
 0x41b   :  { %1209 = vmatprep.subr.bf16.mxu1 %v1426_v0 }
 0x4e8   :  { %v618_v38 = vpop.f32.mrb[16].mxu1 }
 0x4e9   :  { %v633_v40 = vpack.c.bf16 %v618_v38, %v618_v38  ;;  %v1170_v41 = vpop.f32.mrb[17].mxu1 }
 0x4ea   :  { %v621_v42 = vpop.f32.mrb[18].mxu1 }
 0x4eb   :  { %v1171_v43 = vpop.f32.mrb[19].mxu1  ;;  %1177 = vmatmul.mubr.msk.bf16.vlgmr.msra.gmra.mrb[20].mxu0 %vm375_vm2, %v633_v40 }
 0x4ec   :  { %1181 = vmatpush3.bf16.msra.mxu0 %v1236_v39  ;;  %1184 = vmatprep.mubr.msk.bf16.mxu0 %vm1425_vm3, %v1424_v23 }
 0x4ed   :  { %1182 = vmatprep.subr.bf16.mxu0 %v1424_v23 }
 0x4f0   :  { %1183 = vmatpush3.bf16.msra.mxu0 %v1237_v44 }
 0x4f1   :  { %1196 = vmatprep.subr.bf16.mxu0 %v1424_v23 }
 0x4f3   :  { %1185 = vmatmul.mubr.msk.bf16.vlgmr.msra.gmra.mrb[24].mxu0 %vm375_vm2, %v628_v45 }
 0x4f4   :  { %1198 = vmatprep.mubr.msk.bf16.mxu0 %vm1425_vm3, %v1424_v23  ;;  %1197 = vmatpush3.bf16.msra.mxu0 %v1240_v61 }
 0x5be   :  { %v683_v48 = vpop.f32.mrb[20].mxu0 }
 0x5bf   :  { %v1178_v49 = vpop.f32.mrb[21].mxu0 }
 0x5c0   :  { %v686_v50 = vpop.f32.mrb[22].mxu0 }
 0x5c1   :  { %v1179_v51 = vpop.f32.mrb[23].mxu0 }
 0x5c6   :  { %v738_v52 = vpop.f32.mrb[24].mxu0 }
 0x5c7   :  { %v739_v54 = vadd.f32 %v738_v52, %v683_v48  ;;  %v1186_v55 = vpop.f32.mrb[25].mxu0 }
 0x5c8   :  { %v741_v56 = vpop.f32.mrb[26].mxu0 }
 0x5c9   :  { %v751_v57 = vadd.f32 %v1033_v53, %v739_v54  ;;  %v1187_v58 = vpop.f32.mrb[27].mxu0 }
 0x5cb   :  { %v752_v59 = vmax.f32 %v751_v57, 0.0 }
 0x5cd   :  { %v757_v60 = vpack.c.bf16 %v752_v59, %v752_v59 }
 0x5cf   :  { %1193 = vmatmul.mubr.msk.bf16.vlgmr.msra.gmra.mrb[20].mxu1 %vm375_vm2, %v757_v60 }
 0x5d0   :  { %1206 = vmatprep.mubr.msk.f32.mxu1 %vm1425_vm3, %v1424_v23  ;;  %1211 = vmatpush3.bf16.msra.mxu1 %v1210_v1 }
 0x6a2   :  { %v814_v3 = vpop.f32.mrb[20].mxu1 }
 0x6a3   :  { %v815_v23 = vadd.f32 %v1034_v2, %v814_v3  ;;  %v1194_v4 = vpop.f32.mrb[21].mxu1 }
 0x6a4   :  { %v817_v5 = vpop.f32.mrb[22].mxu1 }
 0x6a5   :  { %v820_v6 = vmax.f32 %v815_v23, 0.0  ;;  %v1195_v7 = vpop.f32.mrb[23].mxu1 }
 0x6a7   :  { %v823_v8 = vpack.c.bf16 %v820_v6, %v820_v6 }
 0x6a9   :  { %1199 = vmatmul.mubr.msk.bf16.vlgmr.msra.gmra.mrb[28].mxu0 %vm160_vm0, %v823_v8 }
 0x77c   :  { %v874_v10 = vpop.f32.mrb[28].mxu0 }
 0x77d   :  { %v875_v11 = vadd.f32 %v1038_v9, %v874_v10  ;;  %v1200_v12 = vpop.f32.mrb[29].mxu0 }
 0x77e   :  { %v877_v13 = vpop.f32.mrb[30].mxu0 }
 0x77f   :  { %v880_v14 = vmax.f32 %v875_v11, 0.0  ;;  %v1201_v15 = vpop.f32.mrb[31].mxu0 }
 0x781   :  { %1207 = vmatmul.mubr.msk.f32.vlgmr.msra.gmra.mrb[24].mxu1 %vm160_vm0, %v880_v14 }
 0x854   :  { %v959_v19 = vpop.f32.mrb[24].mxu1 }
 0x855   :  { %v960_v20 = vadd.f32 %v1041_v18, %v959_v19  ;;  %v1208_v21 = vpop.f32.mrb[25].mxu1 }
 0x857   :  { %v966_v22 = vsel %vm965_vm4, %v960_v20, -1e+30 }
 0x858   :  { %967 = vmax.xlane.f32.xlu0 %v966_v22 }
 0x8e5   :  { %v968_v24 = vpop.xlane.xlu0 %967 }
 0x8e6   :  { %v969_v25 = vsub.f32 %v966_v22, %v968_v24 }
 0x8e8   :  { %v970_v26 = vmul.f32 1.442695, %v969_v25 }
 0x8ea   :  { %1273 = vpow2.f32 %v970_v26 }
 0x8f4   :  { %v1274_v27 = vpop.eup %1273 }
 0x8f5   :  { %v972_v28 = vsel %vm965_vm4, %v1274_v27, 0.0 }
 0x8f6   :  { %973 = vadd.xlane.f32.xlu0 %v972_v28 }
 0x983   :  { %v974_v29 = vpop.xlane.xlu0 %973 }
 0x984   :  { %1275 = vlog2.f32 %v974_v29 }
 0x98e   :  { %v1276_v30 = vpop.eup %1275 }
 0x98f   :  { %v976_v31 = vmul.f32 0.6931472, %v1276_v30 }
 0x991   :  { %v977_v32 = vsub.f32 %v969_v25, %v976_v31 }
 0x993   :  { %978 = vst [vmem:[#allocation11] sm:$0xff] %v977_v32 }
 0x994   :  { %1398 = shalt.err (!%p1395_p2)
}
 0x995   :  { %s1737_s6 = sld [smem:[#allocation17_spill]] }
 0x99b   :  { %s1399_s29 = scalar_lea.hbm %s1737_s6, 128 }
 0x99c   :  { %p1400_p3 = scmp.ne.s32.totalorder %s1737_s6, %s1399_s29  ;;  %p1403_p4 = scmp.lt.u32.totalorder %s1399_s29, %s1737_s6 }
 0x99e   :  { %p1405_p5 = pnand %p1403_p4, %p1400_p3 }
 0x9a0   :  { %1408 = shalt.err (!%p1405_p5)
}
 0x9a1   :  { %988 = dma.vmem_to_hbm [thread:$0]  %s986_s22, 128, %s1737_s6, [#allocation4]  }
 0x9a2   :  { %1415 = dma.done.wait [#allocation4], 128  }
 0x9a3   :  { %1416 = vsyncadd [#allocation4], 4294967168 }
 0x9a4   :  { %992 = vsyncpa [#allocation3], 1 }
 0x9a5   :  { %993 = vsyncpa [#allocation6], 1 }
 0x9a6   :  { %994 = vsyncpa [#allocation9], 1 }
 0x9a7   :  { %995 = vsyncpa [#allocation4], 1 }

</bundles_post_ra>
